<compile_context>
chip_gen: v7x
topology: tpu7x:2x2x1
jax: 0.10.0
libtpu: 0.0.40
codegen_flags: <defaults>
</compile_context>

<pallas_src>
import jax
import jax.numpy as jnp
from jax.experimental import pallas as pl
from jax.experimental.pallas import tpu as pltpu


def _cdiv(a, b):
    return -(-a // b)


def _logit_loss_kernel(logits_ref, labels_ref, out_ref, acc_ref):
    """One (row-block, col-block) tile of the masked gather-sum.

    logits_ref: (TB, TC) block of logits, native dtype (VMEM)
    labels_ref: (TB, 1) int32 labels for this row block (VMEM)
    out_ref:    (1, 1) float32 partial sum for this row block (SMEM)
    acc_ref:    (TB, TC) float32 VMEM accumulator (scratch, persists over grid)
    """
    j = pl.program_id(1)
    n_col_blocks = pl.num_programs(1)

    # New row block starts -> zero the element-wise accumulator.
    @pl.when(j == 0)
    def _():
        acc_ref[...] = jnp.zeros_like(acc_ref)

    tb, tc = acc_ref.shape
    lbl = labels_ref[...]                                        # (TB, 1) int32
    col = j * tc + jax.lax.broadcasted_iota(jnp.int32, (tb, tc), 1)
    tile = logits_ref[...].astype(jnp.float32)                   # upcast in-kernel
    # VPU-only select + add; each row matches at most one column overall.
    acc_ref[...] += jnp.where(col == lbl, tile, jnp.float32(0.0))

    # Single cross-lane reduce + scalar store, once per row block.
    @pl.when(j == n_col_blocks - 1)
    def _():
        out_ref[0, 0] = jnp.sum(acc_ref[...])


def logit_loss(logits: jax.Array, labels: jax.Array, targeted: bool = True,
               *, tb: int = 256, tc: int = 1024) -> jax.Array:
    """Pallas implementation of LogitLoss.forward. Returns a scalar float32."""
    B, C = logits.shape
    itemsize = jnp.dtype(logits.dtype).itemsize
    # Sublane packing per dtype: 8 rows for 4-byte, 16 for 2-byte, 32 for 1-byte.
    sub = {4: 8, 2: 16, 1: 32}.get(itemsize, 8)

    # Row-block height: full B if it fits in one block (block == full dim is
    # always legal), otherwise a multiple of the dtype's sublane packing.
    if B <= tb:
        TB = B
    else:
        TB = max(sub, (tb // sub) * sub)
    # Column-block width: full C if it fits (block == full dim), else a
    # multiple of 128 lanes.
    if C <= tc:
        TC = C
    else:
        TC = max(128, (tc // 128) * 128)

    nI = _cdiv(B, TB)
    nJ = _cdiv(C, TC)
    B_pad = nI * TB

    labels_i32 = labels.astype(jnp.int32).reshape(B)
    if B_pad > B:
        # Padding rows get label -1: they never match any column, so garbage
        # logits in the overhang rows never leak into the sum.
        labels_i32 = jnp.concatenate(
            [labels_i32, jnp.full((B_pad - B,), -1, jnp.int32)])
    labels2d = labels_i32.reshape(B_pad, 1)

    grid_spec = pltpu.PrefetchScalarGridSpec(
        num_scalar_prefetch=0,
        grid=(nI, nJ),
        in_specs=[
            # Dense logits tile: large contiguous DMA, double-buffered by Pallas.
            pl.BlockSpec((TB, TC), lambda i, j: (i, j)),
            # Per-row-block labels column.
            pl.BlockSpec((TB, 1), lambda i, j: (i, 0)),
        ],
        # One scalar partial sum per row block; revisited across the column
        # (reduction) axis, written only on its last step.
        out_specs=pl.BlockSpec((1, 1), lambda i, j: (i, 0),
                               memory_space=pltpu.SMEM),
        scratch_shapes=[pltpu.VMEM((TB, TC), jnp.float32)],
    )

    bytes_accessed = B_pad * nJ * TC * itemsize + B_pad * 4 + nI * 4
    partials = pl.pallas_call(
        _logit_loss_kernel,
        out_shape=jax.ShapeDtypeStruct((nI, 1), jnp.float32),
        grid_spec=grid_spec,
        compiler_params=pltpu.CompilerParams(
            # Row blocks are independent (megacore-shardable on v7x);
            # the column axis revisits the accumulator -> "arbitrary".
            dimension_semantics=("parallel", "arbitrary"),
        ),
        cost_estimate=pl.CostEstimate(
            flops=3 * B_pad * nJ * TC, transcendentals=0,
            bytes_accessed=bytes_accessed),
    )(logits, labels2d)

    loss = jnp.sum(partials)
    # Apply sign outside the kernel: only one Mosaic kernel compiled/cached.
    if not targeted:
        loss = -loss
    return loss


if __name__ == "__main__":
    key = jax.random.PRNGKey(0)
    k1, k2, k3, k4, k5, k6 = jax.random.split(key, 6)

    def ref_loss(logits, labels, targeted):
        real = jnp.take_along_axis(
            logits.astype(jnp.float32), labels[:, None].astype(jnp.int32), axis=1)
        s = jnp.sum(real)
        return s if targeted else -s

    # Case 1: small single-tile (B=8, C=32), f32, targeted + untargeted.
    B1, C1 = 8, 32
    logits1 = jax.random.normal(k1, (B1, C1), dtype=jnp.float32)
    labels1 = jax.random.randint(k2, (B1,), 0, C1, dtype=jnp.int32)
    out_t = jax.block_until_ready(logit_loss(logits1, labels1, targeted=True))
    out_u = jax.block_until_ready(logit_loss(logits1, labels1, targeted=False))
    assert jnp.allclose(out_t, ref_loss(logits1, labels1, True),
                        atol=1e-5, rtol=1e-5), (out_t, ref_loss(logits1, labels1, True))
    assert jnp.allclose(out_u, ref_loss(logits1, labels1, False),
                        atol=1e-5, rtol=1e-5), (out_u, ref_loss(logits1, labels1, False))

    # Case 2: f32, multiple row & column blocks with row + column overhang
    # (B=20 padded to 24 rows, C=200 covered by 2x128 column blocks).
    B2, C2 = 20, 200
    logits2 = jax.random.normal(k3, (B2, C2), dtype=jnp.float32)
    labels2 = jax.random.randint(k4, (B2,), 0, C2, dtype=jnp.int32)
    out2 = jax.block_until_ready(
        logit_loss(logits2, labels2, targeted=True, tb=8, tc=128))
    assert jnp.allclose(out2, ref_loss(logits2, labels2, True),
                        atol=1e-4, rtol=1e-4), (out2, ref_loss(logits2, labels2, True))

    # Case 3: bf16, multi-block path with 16-row (dtype-packed) tiles and
    # in-kernel upcast (B=40 -> 3 row blocks of 16, C=300 -> 3 col blocks of 128).
    B3, C3 = 40, 300
    logits3 = jax.random.normal(k5, (B3, C3), dtype=jnp.float32).astype(jnp.bfloat16)
    labels3 = jax.random.randint(k6, (B3,), 0, C3, dtype=jnp.int32)
    out3 = jax.block_until_ready(
        logit_loss(logits3, labels3, targeted=True, tb=16, tc=128))
    assert jnp.allclose(out3, ref_loss(logits3, labels3, True),
                        atol=1e-2, rtol=1e-2), (out3, ref_loss(logits3, labels3, True))

    print("KERNEL_OK")
</pallas_src>

<mosaic_0001>
module attributes {stable_mosaic.version = 11 : i64} {
  func.func @_logit_loss_kernel(%arg0: i32, %arg1: i32, %arg2: memref<8x32xf32, #tpu.memory_space<vmem>>, %arg3: memref<8x1xi32, #tpu.memory_space<vmem>>, %arg4: memref<1x1xf32, #tpu.memory_space<smem>>, %arg5: memref<8x32xf32, #tpu.memory_space<vmem>>) attributes {dimension_semantics = [#tpu.dimension_semantics<parallel>, #tpu.dimension_semantics<arbitrary>], iteration_bounds = array<i64: 1, 1>, scalar_prefetch = 0 : i64, scratch_operands = 1 : i64, tpu.core_type = #tpu.core_type<tc>, window_params = [{transform_indices = @transform_0, window_bounds = array<i64: 8, 32>}, {transform_indices = @transform_1, window_bounds = array<i64: 8, 1>}, {transform_indices = @transform_2, window_bounds = array<i64: 1, 1>}]} {
    %c0_i32 = arith.constant 0 : i32
    %0 = arith.cmpi eq, %arg1, %c0_i32 : i32
    %1 = arith.extui %0 : i1 to i32
    %c0_i32_0 = arith.constant 0 : i32
    %2 = arith.cmpi ne, %1, %c0_i32_0 : i32
    scf.if %2 {
      %cst_10 = arith.constant 0.000000e+00 : f32
      %19 = vector.broadcast %cst_10 : f32 to vector<8x32xf32>
      %c0_11 = arith.constant 0 : index
      %c0_12 = arith.constant 0 : index
      %20 = vector.load %arg5[%c0_11, %c0_12] : memref<8x32xf32, #tpu.memory_space<vmem>>, vector<8x32xf32>
      tpu.vector_store %arg5[%c0_11, %c0_12], %19 {strides = array<i32>} : memref<8x32xf32, #tpu.memory_space<vmem>>, vector<8x32xf32>,
    } else {
    }
    %c0 = arith.constant 0 : index
    %c0_1 = arith.constant 0 : index
    %3 = vector.load %arg3[%c0, %c0_1] : memref<8x1xi32, #tpu.memory_space<vmem>>, vector<8x1xi32>
    %c32_i32 = arith.constant 32 : i32
    %4 = arith.muli %arg1, %c32_i32 : i32
    %5 = tpu.iota {dimensions = array<i32: 1>} : vector<8x32xi32>
    %6 = vector.broadcast %4 : i32 to vector<8x32xi32>
    %7 = arith.addi %6, %5 : vector<8x32xi32>
    %c0_2 = arith.constant 0 : index
    %c0_3 = arith.constant 0 : index
    %8 = vector.load %arg2[%c0_2, %c0_3] : memref<8x32xf32, #tpu.memory_space<vmem>>, vector<8x32xf32>
    %c0_4 = arith.constant 0 : index
    %c0_5 = arith.constant 0 : index
    %9 = vector.load %arg5[%c0_4, %c0_5] : memref<8x32xf32, #tpu.memory_space<vmem>>, vector<8x32xf32>
    %10 = vector.broadcast %3 : vector<8x1xi32> to vector<8x32xi32>
    %11 = arith.cmpi eq, %7, %10 : vector<8x32xi32>
    %cst = arith.constant 0.000000e+00 : f32
    %12 = vector.broadcast %cst : f32 to vector<8x32xf32>
    %13 = arith.select %11, %8, %12 : vector<8x32xi1>, vector<8x32xf32>
    %14 = arith.addf %9, %13 : vector<8x32xf32>
    %c0_6 = arith.constant 0 : index
    %c0_7 = arith.constant 0 : index
    %15 = vector.load %arg5[%c0_6, %c0_7] : memref<8x32xf32, #tpu.memory_space<vmem>>, vector<8x32xf32>
    tpu.vector_store %arg5[%c0_6, %c0_7], %14 {strides = array<i32>} : memref<8x32xf32, #tpu.memory_space<vmem>>, vector<8x32xf32>,
    %c0_i32_8 = arith.constant 0 : i32
    %16 = arith.cmpi eq, %arg1, %c0_i32_8 : i32
    %17 = arith.extui %16 : i1 to i32
    %c0_i32_9 = arith.constant 0 : i32
    %18 = arith.cmpi ne, %17, %c0_i32_9 : i32
    scf.if %18 {
      %c0_10 = arith.constant 0 : index
      %c0_11 = arith.constant 0 : index
      %19 = vector.load %arg5[%c0_10, %c0_11] : memref<8x32xf32, #tpu.memory_space<vmem>>, vector<8x32xf32>
      %20 = vector.shape_cast %19 : vector<8x32xf32> to vector<1x8x32xf32>
      %cst_12 = arith.constant dense<0.000000e+00> : vector<1xf32>
      %21 = vector.multi_reduction <add>, %20, %cst_12 [1, 2] : vector<1x8x32xf32> to vector<1xf32>
      %22 = vector.shape_cast %21 : vector<1xf32> to vector<1x1x1xf32>
      %23 = vector.extract %22[0, 0, 0] : f32 from vector<1x1x1xf32>
      %c0_13 = arith.constant 0 : index
      %c0_14 = arith.constant 0 : index
      %24 = memref.load %arg4[%c0_13, %c0_14] : memref<1x1xf32, #tpu.memory_space<smem>>
      memref.store %23, %arg4[%c0_13, %c0_14] : memref<1x1xf32, #tpu.memory_space<smem>>
    } else {
    }
    return
  }
  func.func @transform_0(%arg0: i32, %arg1: i32) -> (i32, i32) {
    %c0_i32 = arith.constant 0 : i32
    return %arg0, %arg1 : i32, i32
  }
  func.func @transform_1(%arg0: i32, %arg1: i32) -> (i32, i32) {
    %c0_i32 = arith.constant 0 : i32
    %c0_i32_0 = arith.constant 0 : i32
    return %arg0, %c0_i32 : i32, i32
  }
  func.func @transform_2(%arg0: i32, %arg1: i32) -> (i32, i32) {
    %c0_i32 = arith.constant 0 : i32
    %c0_i32_0 = arith.constant 0 : i32
    return %arg0, %c0_i32 : i32, i32
  }
}

</mosaic_0001>

<bundles_post_ra>
// kernel: tpu_custom_call.1
= control target key start
LH: loop header
LB: loop body
LE: loop exit
PB: predicated region body
PF: predicated region fallthrough
CT: control target
= control target key end

     0   :  { %vm16_vm0 = vcmask 261120   ;;  %v81_v1 = vmov 0   ;;  %v82_v2 = vmov 0.0   ;;  %s120_s0 = inlined_call_operand.vmem [shape: f32[8,32], index: 0, kind: input, shape index: {}]   ;;  %s121_s1 = inlined_call_operand.vmem [shape: s32[8,1], index: 1, kind: input, shape index: {}]   ;;  %s122_s2 = inlined_call_operand.hbm [shape: f32[1,1], index: 2, kind: output, shape index: {}]  }
   0x1   :  { %v18_v0 = vld [vmem:[%s121_s1] sm:$0xff]  ;;  %68 = vset.pattern.permute.xlu0 %v81_v1  ;;  %17 = vst.msk [vmem:[#allocation2] sm:$0xff] %vm16_vm0, %v82_v2 }
   0x2   :  { %7 = vsyncpa [#allocation4], 0  ;;  %27 = vperm.xlu0 %68, %v18_v0   ;;  %v20_v3 = vlaneseq  ;;  %v24_v5 = vld [vmem:[%s120_s0] sm:$0xff]  ;;  %s69_s14 = scalar_lea.hbm %s122_s2, 16 }
   0x3   :  { %p70_p0 = scmp.ne.s32.totalorder %s122_s2, %s69_s14  ;;  %p73_p1 = scmp.lt.u32.totalorder %s69_s14, %s122_s2 }
   0x4   :  { %v21_v4 = vand.u32 127, %v20_v3 }
   0x5   :  { %p75_p2 = pnand %p73_p1, %p70_p0 }
   0x8   :  { %v25_v7 = vld [vmem:[#allocation2] sm:$0xff] }
  0x81   :  { %v28_v6 = vpop.permute.xlu0 %27 }
  0x82   :  { %vm29_vm1 = vcmp.eq.s32.totalorder %v21_v4, %v28_v6 }
  0x83   :  { %v30_v8 = vsel %vm29_vm1, %v24_v5, 0.0 }
  0x84   :  { %v31_v9 = vadd.f32 %v30_v8, %v25_v7 }
  0x86   :  { %33 = vst.msk [vmem:[#allocation2] sm:$0xff] %vm16_vm0, %v31_v9 }
  0x8d   :  { %v37_v10 = vld [vmem:[#allocation2] sm:$0xff] }
  0x8e   :  { %v38_v11 = vsel %vm16_vm0, %v37_v10, 0.0 }
  0x8f   :  { %39 = vadd.xlane.f32.xlu0 %v38_v11 }
 0x11c   :  { %v40_v12 = vpop.xlane.xlu0 %39 }
 0x11d   :  { %v41_v13 = vrot.slane %v40_v12, 4 }
 0x11f   :  { %v42_v14 = vadd.f32 %v41_v13, %v40_v12 }
 0x121   :  { %v43_v15 = vrot.slane %v42_v14, 2 }
 0x123   :  { %v44_v16 = vadd.f32 %v43_v15, %v42_v14 }
 0x125   :  { %v45_v17 = vrot.slane %v44_v16, 1 }
 0x127   :  { %v46_v18 = vadd.f32 %v45_v17, %v44_v16 }
 0x129   :  { %63 = vpush %v46_v18 }
 0x15a   :  { %s64_s0 = spop %63 }
 0x15b   :  { %49 = sst [smem:[#allocation3]] %s64_s0 }
 0x15c   :  { %78 = shalt.err (!%p75_p2)
}
 0x15d   :  { %s83_s19 = smov [#allocation3]  }
 0x15e   :  { %57 = dma.smem_to_hbm %s83_s19, 16, %s122_s2, [#allocation4]  }
 0x15f   :  { %79 = dma.done.wait [#allocation4], 16  }
 0x160   :  { %80 = vsyncadd [#allocation4], 4294967280 }
 0x161   :  { %61 = sfence }
 0x162   :  { %62 = vsyncpa [#allocation4], 1 }

</bundles_post_ra>
